<compile_context>
chip_gen: v7x
topology: tpu7x:2x2x1
jax: 0.10.0
libtpu: 0.0.40
codegen_flags: <defaults>
</compile_context>

<pallas_src>
import math

import jax
import jax.numpy as jnp
import numpy as np
from jax.experimental import pallas as pl
from jax.experimental.pallas import tpu as pltpu


# ----------------------------------------------------------------------------
# Deterministic parameter construction (matches GaussianSmoothing.__init__).
# ----------------------------------------------------------------------------
KERNEL_HALF = 3                      # kernel_size = 7
SIGMA = 1.6
GAUSS_B = 0.0                        # conv bias (module copies 0.0 into it)


def _gaussian_1d(kernel_half_size=KERNEL_HALF, sigma=SIGMA):
    k = np.arange(1 + 2 * kernel_half_size, dtype=np.float64)
    mean = (len(k) - 1) / 2.0
    g = (1.0 / (sigma * math.sqrt(2.0 * math.pi))
         * np.exp(-(((k - mean) / sigma) ** 2) / 2.0))
    return (g / g.sum()).astype(np.float32)


def make_gaussian_kernel_2d(kernel_half_size=KERNEL_HALF, sigma=SIGMA, dim=2):
    """Faithful reproduction of the module's 2D kernel (reference only)."""
    kernel_size = 1 + 2 * kernel_half_size
    sizes = [kernel_size] * dim
    sigmas = [float(sigma)] * dim
    kernel = np.ones((), dtype=np.float32)
    grids = np.meshgrid(*[np.arange(s, dtype=np.float32) for s in sizes],
                        indexing="ij")
    for size, std, mgrid in zip(sizes, sigmas, grids):
        mean = (size - 1) / 2.0
        kernel = kernel * (1.0 / (std * math.sqrt(2.0 * math.pi))
                           * np.exp(-(((mgrid - mean) / std) ** 2) / 2.0))
    kernel = kernel / np.sum(kernel)
    return kernel.astype(np.float32)


GAUSS_1D = _gaussian_1d()                        # (7,), sums to 1; outer(g,g) == 2D kernel
GAUSS_TAPS = tuple(float(v) for v in GAUSS_1D)   # compile-time python-float taps
GAUSS_W = make_gaussian_kernel_2d()              # (7, 7) module kernel (reference only)


def _round_up(x, m):
    return ((x + m - 1) // m) * m


# ----------------------------------------------------------------------------
# Pallas kernel: separable gaussian as two 7-tap shift-and-MAC passes.
# ----------------------------------------------------------------------------
def _shifted_tap(x, offset, axis, idx, needs_mask):
    """Return s with s[i] = x[i + offset] along `axis` (wrap-around roll),
    zeroing the wrapped-in region when the zero padding is too thin to
    guarantee it is already zero / discarded."""
    size = x.shape[axis]
    s = pltpu.roll(x, shift=(-offset) % size, axis=axis)
    if not needs_mask:
        return s
    if offset < 0:      # positions [0, -offset) wrapped in from the far end
        return jnp.where(idx >= -offset, s, 0.0)
    else:               # positions [size-offset, size) wrapped in from the start
        return jnp.where(idx < size - offset, s, 0.0)


def _gauss_pass_1d(x, axis, valid_size):
    """'same' 7-tap gaussian along `axis`.  Indices [valid_size, size) of x are
    zero alignment padding; the conv's zero 'same' padding is realised through
    them (plus masks when the padding is thinner than the 3-tap halo)."""
    size = x.shape[axis]
    # Static decision: if the alignment padding already provides a >=3 element
    # zero halo, every wrapped region is zero (or only touches discarded rows /
    # lanes) and no masking is needed.
    needs_mask = (size - valid_size) < KERNEL_HALF
    idx = (jax.lax.broadcasted_iota(jnp.int32, x.shape, axis)
           if needs_mask else None)
    y = x * GAUSS_TAPS[KERNEL_HALF]
    for t in range(1, KERNEL_HALF + 1):
        pair = (_shifted_tap(x, -t, axis, idx, needs_mask)
                + _shifted_tap(x, +t, axis, idx, needs_mask))
        y = y + GAUSS_TAPS[KERNEL_HALF - t] * pair   # symmetry: g[3-t] == g[3+t]
    return y


def _make_gauss_kernel(h_valid, w_valid):
    def kernel(x_ref, o_ref):
        x = x_ref[...].astype(jnp.float32)                    # (B_blk, H_pad, W_pad)
        v = _gauss_pass_1d(x, axis=1, valid_size=h_valid)     # vertical: sublane rolls
        y = _gauss_pass_1d(v, axis=2, valid_size=w_valid)     # horizontal: lane rolls
        if GAUSS_B != 0.0:        # bias is 0.0 -> folded out at trace time
            y = y + GAUSS_B
        o_ref[...] = y.astype(o_ref.dtype)
    return kernel


def gaussian_smoothing(x):
    """x: (N, 1, H, W) float32 -> (N, 1, H, W) float32 (NCHW, like PyTorch)."""
    N, C, H, W = x.shape
    assert C == 1, "module uses Conv2d(in_channels=1, out_channels=1)"

    # Lane/sublane-aligned spatial dims -> unmasked, lane-dense loads/stores.
    H_pad = _round_up(H, 8)
    W_pad = _round_up(W, 128)

    x3 = x.reshape(N, H, W)
    padded = (H_pad, W_pad) != (H, W)
    if padded:
        x3 = jnp.pad(x3, ((0, 0), (0, H_pad - H), (0, W_pad - W)))

    # Batch several whole images per grid step: amortizes per-step overhead for
    # small images while keeping the double-buffered working set well inside
    # VMEM on every generation (v7x: 64 MiB physical).
    bytes_per_image = 4 * H_pad * W_pad
    target_block_bytes = 4 * 2**20
    B_blk = max(1, min(N, target_block_bytes // bytes_per_image))
    while N % B_blk:                 # keep blocks exact (no partial batch block)
        B_blk -= 1
    # TODO(synk): for single images too large for VMEM (roughly > 2k x 2k f32 on
    # v7x) split into two single-axis passes tiled along the non-convolved axis
    # (or row-tile with a 3-row halo via manual DMA); not needed at these sizes.

    block_bytes = 4 * B_blk * H_pad * W_pad
    # in + out blocks are double-buffered by Pallas; the kernel's live f32
    # temporaries (x, v, y, one rolled tap) add roughly 4 more block-sized slabs.
    vmem_need = (2 * 2 + 4) * block_bytes
    vmem_limit = int(min(max(vmem_need, 16 * 2**20), 48 * 2**20))

    # Honest cost: ~28 flops/pixel of useful work, HBM-bound (read + write once).
    flops = int(28 * N * H_pad * W_pad)
    bytes_accessed = int(2 * 4 * N * H_pad * W_pad)

    out = pl.pallas_call(
        _make_gauss_kernel(H, W),
        out_shape=jax.ShapeDtypeStruct((N, H_pad, W_pad), x.dtype),
        grid_spec=pltpu.PrefetchScalarGridSpec(
            num_scalar_prefetch=0,
            grid=(N // B_blk,),
            in_specs=[pl.BlockSpec((B_blk, H_pad, W_pad), lambda n: (n, 0, 0))],
            out_specs=pl.BlockSpec((B_blk, H_pad, W_pad), lambda n: (n, 0, 0)),
        ),
        compiler_params=pltpu.CompilerParams(
            dimension_semantics=("parallel",),
            vmem_limit_bytes=vmem_limit,
        ),
        cost_estimate=pl.CostEstimate(
            flops=flops, transcendentals=0, bytes_accessed=bytes_accessed),
    )(x3)

    if padded:
        out = out[:, :H, :W]
    return out.reshape(N, C, H, W)


# ----------------------------------------------------------------------------
# Reference (plain JAX, uses the module's full 2D kernel) for correctness check.
# ----------------------------------------------------------------------------
def gaussian_smoothing_ref(x):
    w = jnp.asarray(GAUSS_W)[None, None, :, :]   # (O=1, I=1, 7, 7)
    return jax.lax.conv_general_dilated(
        x, w, window_strides=(1, 1), padding=[(KERNEL_HALF, KERNEL_HALF)] * 2,
        dimension_numbers=("NCHW", "OIHW", "NCHW")) + GAUSS_B


if __name__ == "__main__":
    key = jax.random.PRNGKey(0)
    # Small shapes consistent with the module: NCHW with C=1.
    x = jax.random.normal(key, (2, 1, 16, 16), dtype=jnp.float32)

    y = gaussian_smoothing(x)
    y = jax.block_until_ready(y)

    y_ref = jax.block_until_ready(gaussian_smoothing_ref(x))
    np.testing.assert_allclose(np.asarray(y), np.asarray(y_ref),
                               rtol=1e-5, atol=1e-5)

    print("KERNEL_OK")
</pallas_src>

<mosaic_0001>
module attributes {stable_mosaic.version = 11 : i64} {
  func.func @kernel(%arg0: i32, %arg1: memref<2x16x128xf32, #tpu.memory_space<vmem>>, %arg2: memref<2x16x128xf32, #tpu.memory_space<vmem>>) attributes {dimension_semantics = [#tpu.dimension_semantics<parallel>], iteration_bounds = array<i64: 1>, scalar_prefetch = 0 : i64, scratch_operands = 0 : i64, tpu.core_type = #tpu.core_type<tc>, window_params = [{transform_indices = @transform_0, window_bounds = array<i64: 2, 16, 128>}, {transform_indices = @transform_1, window_bounds = array<i64: 2, 16, 128>}]} {
    %c0 = arith.constant 0 : index
    %c0_0 = arith.constant 0 : index
    %c0_1 = arith.constant 0 : index
    %0 = vector.load %arg1[%c0, %c0_0, %c0_1] : memref<2x16x128xf32, #tpu.memory_space<vmem>>, vector<2x16x128xf32>
    %1 = tpu.iota {dimensions = array<i32: 1>} : vector<2x16x128xi32>
    %cst = arith.constant 0.256038338 : f32
    %2 = vector.broadcast %cst : f32 to vector<2x16x128xf32>
    %3 = arith.mulf %0, %2 : vector<2x16x128xf32>
    %c1_i32 = arith.constant 1 : i32
    %4 = tpu.dynamic_rotate %0 by %c1_i32 dim 1 : vector<2x16x128xf32>, i32 -> vector<2x16x128xf32>
    %c1_i32_2 = arith.constant 1 : i32
    %5 = vector.broadcast %c1_i32_2 : i32 to vector<2x16x128xi32>
    %6 = arith.cmpi sge, %1, %5 : vector<2x16x128xi32>
    %cst_3 = arith.constant 0.000000e+00 : f32
    %7 = vector.broadcast %cst_3 : f32 to vector<2x16x128xf32>
    %8 = arith.select %6, %4, %7 : vector<2x16x128xi1>, vector<2x16x128xf32>
    %c15_i32 = arith.constant 15 : i32
    %9 = tpu.dynamic_rotate %0 by %c15_i32 dim 1 : vector<2x16x128xf32>, i32 -> vector<2x16x128xf32>
    %c15_i32_4 = arith.constant 15 : i32
    %10 = vector.broadcast %c15_i32_4 : i32 to vector<2x16x128xi32>
    %11 = arith.cmpi slt, %1, %10 : vector<2x16x128xi32>
    %cst_5 = arith.constant 0.000000e+00 : f32
    %12 = vector.broadcast %cst_5 : f32 to vector<2x16x128xf32>
    %13 = arith.select %11, %9, %12 : vector<2x16x128xi1>, vector<2x16x128xf32>
    %14 = arith.addf %8, %13 : vector<2x16x128xf32>
    %cst_6 = arith.constant 0.210611388 : f32
    %15 = vector.broadcast %cst_6 : f32 to vector<2x16x128xf32>
    %16 = arith.mulf %15, %14 : vector<2x16x128xf32>
    %17 = arith.addf %3, %16 : vector<2x16x128xf32>
    %c2_i32 = arith.constant 2 : i32
    %18 = tpu.dynamic_rotate %0 by %c2_i32 dim 1 : vector<2x16x128xf32>, i32 -> vector<2x16x128xf32>
    %c2_i32_7 = arith.constant 2 : i32
    %19 = vector.broadcast %c2_i32_7 : i32 to vector<2x16x128xi32>
    %20 = arith.cmpi sge, %1, %19 : vector<2x16x128xi32>
    %cst_8 = arith.constant 0.000000e+00 : f32
    %21 = vector.broadcast %cst_8 : f32 to vector<2x16x128xf32>
    %22 = arith.select %20, %18, %21 : vector<2x16x128xi1>, vector<2x16x128xf32>
    %c14_i32 = arith.constant 14 : i32
    %23 = tpu.dynamic_rotate %0 by %c14_i32 dim 1 : vector<2x16x128xf32>, i32 -> vector<2x16x128xf32>
    %c14_i32_9 = arith.constant 14 : i32
    %24 = vector.broadcast %c14_i32_9 : i32 to vector<2x16x128xi32>
    %25 = arith.cmpi slt, %1, %24 : vector<2x16x128xi32>
    %cst_10 = arith.constant 0.000000e+00 : f32
    %26 = vector.broadcast %cst_10 : f32 to vector<2x16x128xf32>
    %27 = arith.select %25, %23, %26 : vector<2x16x128xi1>, vector<2x16x128xf32>
    %28 = arith.addf %22, %27 : vector<2x16x128xf32>
    %cst_11 = arith.constant 0.11722289 : f32
    %29 = vector.broadcast %cst_11 : f32 to vector<2x16x128xf32>
    %30 = arith.mulf %29, %28 : vector<2x16x128xf32>
    %31 = arith.addf %17, %30 : vector<2x16x128xf32>
    %c3_i32 = arith.constant 3 : i32
    %32 = tpu.dynamic_rotate %0 by %c3_i32 dim 1 : vector<2x16x128xf32>, i32 -> vector<2x16x128xf32>
    %c3_i32_12 = arith.constant 3 : i32
    %33 = vector.broadcast %c3_i32_12 : i32 to vector<2x16x128xi32>
    %34 = arith.cmpi sge, %1, %33 : vector<2x16x128xi32>
    %cst_13 = arith.constant 0.000000e+00 : f32
    %35 = vector.broadcast %cst_13 : f32 to vector<2x16x128xf32>
    %36 = arith.select %34, %32, %35 : vector<2x16x128xi1>, vector<2x16x128xf32>
    %c13_i32 = arith.constant 13 : i32
    %37 = tpu.dynamic_rotate %0 by %c13_i32 dim 1 : vector<2x16x128xf32>, i32 -> vector<2x16x128xf32>
    %c13_i32_14 = arith.constant 13 : i32
    %38 = vector.broadcast %c13_i32_14 : i32 to vector<2x16x128xi32>
    %39 = arith.cmpi slt, %1, %38 : vector<2x16x128xi32>
    %cst_15 = arith.constant 0.000000e+00 : f32
    %40 = vector.broadcast %cst_15 : f32 to vector<2x16x128xf32>
    %41 = arith.select %39, %37, %40 : vector<2x16x128xi1>, vector<2x16x128xf32>
    %42 = arith.addf %36, %41 : vector<2x16x128xf32>
    %cst_16 = arith.constant 0.0441465452 : f32
    %43 = vector.broadcast %cst_16 : f32 to vector<2x16x128xf32>
    %44 = arith.mulf %43, %42 : vector<2x16x128xf32>
    %45 = arith.addf %31, %44 : vector<2x16x128xf32>
    %cst_17 = arith.constant 0.256038338 : f32
    %46 = vector.broadcast %cst_17 : f32 to vector<2x16x128xf32>
    %47 = arith.mulf %45, %46 : vector<2x16x128xf32>
    %c1_i32_18 = arith.constant 1 : i32
    %48 = tpu.dynamic_rotate %45 by %c1_i32_18 dim 2 : vector<2x16x128xf32>, i32 -> vector<2x16x128xf32>
    %c127_i32 = arith.constant 127 : i32
    %49 = tpu.dynamic_rotate %45 by %c127_i32 dim 2 : vector<2x16x128xf32>, i32 -> vector<2x16x128xf32>
    %50 = arith.addf %48, %49 : vector<2x16x128xf32>
    %cst_19 = arith.constant 0.210611388 : f32
    %51 = vector.broadcast %cst_19 : f32 to vector<2x16x128xf32>
    %52 = arith.mulf %51, %50 : vector<2x16x128xf32>
    %53 = arith.addf %47, %52 : vector<2x16x128xf32>
    %c2_i32_20 = arith.constant 2 : i32
    %54 = tpu.dynamic_rotate %45 by %c2_i32_20 dim 2 : vector<2x16x128xf32>, i32 -> vector<2x16x128xf32>
    %c126_i32 = arith.constant 126 : i32
    %55 = tpu.dynamic_rotate %45 by %c126_i32 dim 2 : vector<2x16x128xf32>, i32 -> vector<2x16x128xf32>
    %56 = arith.addf %54, %55 : vector<2x16x128xf32>
    %cst_21 = arith.constant 0.11722289 : f32
    %57 = vector.broadcast %cst_21 : f32 to vector<2x16x128xf32>
    %58 = arith.mulf %57, %56 : vector<2x16x128xf32>
    %59 = arith.addf %53, %58 : vector<2x16x128xf32>
    %c3_i32_22 = arith.constant 3 : i32
    %60 = tpu.dynamic_rotate %45 by %c3_i32_22 dim 2 : vector<2x16x128xf32>, i32 -> vector<2x16x128xf32>
    %c125_i32 = arith.constant 125 : i32
    %61 = tpu.dynamic_rotate %45 by %c125_i32 dim 2 : vector<2x16x128xf32>, i32 -> vector<2x16x128xf32>
    %62 = arith.addf %60, %61 : vector<2x16x128xf32>
    %cst_23 = arith.constant 0.0441465452 : f32
    %63 = vector.broadcast %cst_23 : f32 to vector<2x16x128xf32>
    %64 = arith.mulf %63, %62 : vector<2x16x128xf32>
    %65 = arith.addf %59, %64 : vector<2x16x128xf32>
    %c0_24 = arith.constant 0 : index
    %c0_25 = arith.constant 0 : index
    %c0_26 = arith.constant 0 : index
    %66 = vector.load %arg2[%c0_24, %c0_25, %c0_26] : memref<2x16x128xf32, #tpu.memory_space<vmem>>, vector<2x16x128xf32>
    tpu.vector_store %arg2[%c0_24, %c0_25, %c0_26], %65 {strides = array<i32>} : memref<2x16x128xf32, #tpu.memory_space<vmem>>, vector<2x16x128xf32>,
    return
  }
  func.func @transform_0(%arg0: i32) -> (i32, i32, i32) {
    %c0_i32 = arith.constant 0 : i32
    %c0_i32_0 = arith.constant 0 : i32
    %c0_i32_1 = arith.constant 0 : i32
    return %arg0, %c0_i32, %c0_i32_0 : i32, i32, i32
  }
  func.func @transform_1(%arg0: i32) -> (i32, i32, i32) {
    %c0_i32 = arith.constant 0 : i32
    %c0_i32_0 = arith.constant 0 : i32
    %c0_i32_1 = arith.constant 0 : i32
    return %arg0, %c0_i32, %c0_i32_0 : i32, i32, i32
  }
}

</mosaic_0001>

<bundles_post_ra>
// kernel: tpu_custom_call.1
= control target key start
LH: loop header
LB: loop body
LE: loop exit
PB: predicated region body
PF: predicated region fallthrough
CT: control target
= control target key end

     0   :  { %6 = vsyncpa [#allocation3], 0  ;;  %s532_s0 = inlined_call_operand.hbm [shape: f32[2,16,128], index: 0, kind: input, shape index: {}]   ;;  %s533_s1 = inlined_call_operand.hbm [shape: f32[2,16,128], index: 1, kind: output, shape index: {}]  }
   0x1   :  { %7 = vsyncpa [#allocation4], 0  ;;  %s327_s6 = smov [#allocation2]   ;;  %s279_s10 = scalar_lea.hbm %s532_s0, 512 }
   0x2   :  { %s13_s7 = sshll.u32 %s327_s6, 4  ;;  %p280_p0 = scmp.ne.s32.totalorder %s532_s0, %s279_s10  ;;  %s14_s7 = int_to_ptr.vmem [resolvable:$true] %s13_s7 }
   0x3   :  { %p283_p1 = scmp.lt.u32.totalorder %s279_s10, %s532_s0 }
   0x5   :  { %p285_p2 = pnand %p283_p1, %p280_p0 }
   0x7   :  { %288 = shalt.err (!%p285_p2)
}
   0x8   :  { %s289_s15 = scalar_lea.vmem %s14_s7, 512  ;;  %p294_p4 = scmp.lt.s32.totalorder %s14_s7, %s14_s7 }
   0x9   :  { %p290_p3 = scmp.ne.s32.totalorder %s14_s7, %s289_s15  ;;  %p295_p5 = scmp.lt.s32.totalorder %s289_s15, %s289_s15 }
   0xb   :  { %p296_p6 = por %p295_p5, %p294_p4 }
   0xd   :  { %p297_p7 = pnand %p296_p6, %p290_p3 }
   0xf   :  { %300 = shalt.err (!%p297_p7)
}
  0x10   :  { %s328_s16 = smov 128   ;;  %s329_s17 = smov 8  }
  0x11   :  { %19 = dma.hbm_to_vmem [thread:$0]  %s532_s0, 512, %s14_s7, [#allocation3], %s328_s16, %s328_s16, %s329_s17  }
  0x12   :  { %323 = dma.done.wait [#allocation3], 512  }
  0x13   :  { %324 = vsyncadd [#allocation3], 4294966784  ;;  %v27_v0 = vlaneseq  ;;  %v370_v2 = vld [vmem:[#allocation2 + $0x10] sm:$0xff]  ;;  %v372_v3 = vld [vmem:[#allocation2 + $0x18] sm:$0xff]  ;;  %s330_s0 = smov 1   ;;  %s331_s20 = smov 127  }
  0x14   :  { %v32_v5 = vmul.f32 0.25603834, %v370_v2  ;;  %v35_v6 = vrot.slane %v370_v2, 7  ;;  %v37_v7 = vrot.slane %v372_v3, 7  ;;  %v50_v8 = vrot.slane %v370_v2, 1  ;;  %v400_v21 = vld [vmem:[#allocation2] sm:$0xff] }
  0x15   :  { %v362_v1 = vshrl.u32 %v27_v0, 7  ;;  %v52_v9 = vrot.slane %v372_v3, 1  ;;  %v77_v10 = vrot.slane %v370_v2, 6  ;;  %v79_v11 = vrot.slane %v372_v3, 6  ;;  %v402_v22 = vld [vmem:[#allocation2 + $0x8] sm:$0xff]  ;;  %s332_s21 = smov 2  }
  0x16   :  { %v92_v12 = vrot.slane %v370_v2, 2  ;;  %v94_v14 = vrot.slane %v372_v3, 2  ;;  %v119_v15 = vrot.slane %v370_v2, 5  ;;  %v121_v16 = vrot.slane %v372_v3, 5  ;;  %s333_s22 = smov 126   ;;  %s334_s23 = smov 3  }
  0x17   :  { %vm38_vm0 = vcmp.lt.s32.totalorder %v362_v1, 1  ;;  %vm43_vm1 = vcmp.ge.s32.totalorder %v362_v1, 1  ;;  %vm53_vm2 = vcmp.lt.s32.totalorder %v362_v1, 7  ;;  %vm80_vm3 = vcmp.lt.s32.totalorder %v362_v1, 2  ;;  %s335_s24 = smov 125   ;;  %s336_s25 = smov [#allocation5]  }
  0x18   :  { %vm85_vm4 = vcmp.ge.s32.totalorder %v362_v1, 2  ;;  %vm95_vm5 = vcmp.lt.s32.totalorder %v362_v1, 6  ;;  %vm122_vm6 = vcmp.lt.s32.totalorder %v362_v1, 3  ;;  %vm127_vm7 = vcmp.ge.s32.totalorder %v362_v1, 3  ;;  %s257_s26 = sshll.u32 %s336_s25, 4  ;;  %s258_s26 = int_to_ptr.vmem [resolvable:$true] %s257_s26 }
  0x19   :  { %vm137_vm8 = vcmp.lt.s32.totalorder %v362_v1, 5  ;;  %v378_v4 = vadd.s32 8, %v362_v1  ;;  %v42_v13 = vsel %vm38_vm0, %v37_v7, %v35_v6  ;;  %v55_v18 = vsel %vm53_vm2, %v50_v8, %v52_v9  ;;  %s301_s27 = scalar_lea.vmem %s258_s26, 512  ;;  %p306_p9 = scmp.lt.s32.totalorder %s258_s26, %s258_s26 }
  0x1a   :  { %v47_v17 = vsel %vm43_vm1, %v42_v13, 0.0  ;;  %v84_v19 = vsel %vm80_vm3, %v79_v11, %v77_v10  ;;  %v134_v20 = vrot.slane %v370_v2, 3  ;;  %v97_v25 = vsel %vm95_vm5, %v92_v12, %v94_v14  ;;  %p302_p8 = scmp.ne.s32.totalorder %s258_s26, %s301_s27  ;;  %p307_p10 = scmp.lt.s32.totalorder %s301_s27, %s301_s27 }
  0x1b   :  { %v66_v23 = vadd.f32 %v55_v18, %v47_v17  ;;  %v89_v24 = vsel %vm85_vm4, %v84_v19, 0.0  ;;  %v126_v26 = vsel %vm122_vm6, %v121_v16, %v119_v15  ;;  %v136_v29 = vrot.slane %v372_v3, 3 }
  0x1c   :  { %v108_v27 = vadd.f32 %v97_v25, %v89_v24  ;;  %v131_v28 = vsel %vm127_vm7, %v126_v26, 0.0  ;;  %v30_v30 = vmul.f32 0.25603834, %v400_v21  ;;  %v34_v32 = vrot.slane %v400_v21, 7  ;;  %p308_p11 = por %p307_p10, %p306_p9 }
  0x1d   :  { %v70_v31 = vmul.f32 0.21061139, %v66_v23  ;;  %v36_v33 = vrot.slane %v402_v22, 7  ;;  %v49_v34 = vrot.slane %v400_v21, 1  ;;  %v139_v36 = vsel %vm137_vm8, %v134_v20, %v136_v29 }
  0x1e   :  { %v112_v35 = vmul.f32 0.11722289, %v108_v27  ;;  %v51_v37 = vrot.slane %v402_v22, 1  ;;  %v76_v38 = vrot.slane %v400_v21, 6  ;;  %v150_v40 = vadd.f32 %v139_v36, %v131_v28  ;;  %p309_p12 = pnand %p308_p11, %p302_p8 }
  0x1f   :  { %v74_v39 = vadd.f32 %v70_v31, %v32_v5  ;;  %v41_v41 = vsel %vm38_vm0, %v36_v33, %v34_v32  ;;  %v78_v42 = vrot.slane %v402_v22, 6  ;;  %v91_v45 = vrot.slane %v400_v21, 2 }
  0x20   :  { %v45_v43 = vsel %vm43_vm1, %v41_v41, 0.0  ;;  %v54_v44 = vsel %vm53_vm2, %v49_v34, %v51_v37  ;;  %v93_v46 = vrot.slane %v402_v22, 2  ;;  %v154_v48 = vmul.f32 0.044146545, %v150_v40 }
  0x21   :  { %v116_v47 = vadd.f32 %v112_v35, %v74_v39  ;;  %v64_v49 = vadd.f32 %v54_v44, %v45_v43  ;;  %v83_v50 = vsel %vm80_vm3, %v78_v42, %v76_v38  ;;  %v118_v53 = vrot.slane %v400_v21, 5 }
  0x22   :  { %v87_v51 = vsel %vm85_vm4, %v83_v50, 0.0  ;;  %v96_v52 = vsel %vm95_vm5, %v91_v45, %v93_v46  ;;  %v120_v54 = vrot.slane %v402_v22, 5  ;;  %v133_v58 = vrot.slane %v400_v21, 3 }
  0x23   :  { %v442_v55 = vadd.f32 %v154_v48, %v116_v47  ;;  %v68_v56 = vmul.f32 0.21061139, %v64_v49  ;;  %v106_v57 = vadd.f32 %v96_v52, %v87_v51  ;;  %v135_v60 = vrot.slane %v402_v22, 3 }
  0x24   :  { %v125_v59 = vsel %vm122_vm6, %v120_v54, %v118_v53  ;;  %v33_v61 = vmul.f32 0.25603834, %v372_v3  ;;  %v40_v62 = vsel %vm38_vm0, %v35_v6, %v37_v7  ;;  %v57_v13 = vsel %vm53_vm2, %v52_v9, %v50_v8 }
  0x25   :  { %168 = vrot.lane.b32.xlu1 %v442_v55, %s330_s0  ;;  %v72_v63 = vadd.f32 %v68_v56, %v30_v30  ;;  %v110_v0 = vmul.f32 0.11722289, %v106_v57  ;;  %v129_v5 = vsel %vm127_vm7, %v125_v59, 0.0  ;;  %v138_v17 = vsel %vm137_vm8, %v133_v58, %v135_v60 }
  0x26   :  { %vm59_vm9 = vcmp.lt.s32.totalorder %v378_v4, 15  ;;  %v82_v6 = vsel %vm80_vm3, %v77_v10, %v79_v11  ;;  %v99_v7 = vsel %vm95_vm5, %v94_v14, %v92_v12  ;;  %v148_v19 = vadd.f32 %v138_v17, %v129_v5 }
  0x27   :  { %v114_v18 = vadd.f32 %v110_v0, %v72_v63  ;;  %v63_v21 = vsel %vm59_vm9, %v57_v13, 0.0  ;;  %vm101_vm10 = vcmp.lt.s32.totalorder %v378_v4, 14  ;;  %v124_v9 = vsel %vm122_vm6, %v119_v15, %v121_v16 }
  0x28   :  { %v67_v23 = vadd.f32 %v63_v21, %v40_v62  ;;  %v105_v8 = vsel %vm101_vm10, %v99_v7, 0.0  ;;  %v141_v10 = vsel %vm137_vm8, %v136_v29, %v134_v20  ;;  %v152_v11 = vmul.f32 0.044146545, %v148_v19 }
  0x29   :  { %v109_v12 = vadd.f32 %v105_v8, %v82_v6  ;;  %vm143_vm11 = vcmp.lt.s32.totalorder %v378_v4, 13  ;;  %v31_v14 = vmul.f32 0.25603834, %v402_v22  ;;  %v39_v3 = vsel %vm38_vm0, %v34_v32, %v36_v33 }
  0x2a   :  { %v71_v24 = vmul.f32 0.21061139, %v67_v23  ;;  %v147_v25 = vsel %vm143_vm11, %v141_v10, 0.0  ;;  %v56_v2 = vsel %vm53_vm2, %v51_v37, %v49_v34  ;;  %v485_v15 = vadd.f32 %v152_v11, %v114_v18 }
  0x2b   :  { %v113_v16 = vmul.f32 0.11722289, %v109_v12  ;;  %v151_v20 = vadd.f32 %v147_v25, %v124_v9  ;;  %v61_v26 = vsel %vm59_vm9, %v56_v2, 0.0  ;;  %v81_v22 = vsel %vm80_vm3, %v76_v38, %v78_v42 }
  0x2c   :  { %v75_v27 = vadd.f32 %v71_v24, %v33_v61  ;;  %v65_v28 = vadd.f32 %v61_v26, %v39_v3  ;;  %v98_v29 = vsel %vm95_vm5, %v93_v46, %v91_v45  ;;  %164 = vrot.lane.b32.xlu0 %v485_v15, %s330_s0  ;;  %v123_v32 = vsel %vm122_vm6, %v118_v53, %v120_v54 }
  0x2d   :  { %v155_v30 = vmul.f32 0.044146545, %v151_v20  ;;  %v103_v31 = vsel %vm101_vm10, %v98_v29, 0.0  ;;  %v140_v33 = vsel %vm137_vm8, %v135_v60, %v133_v58  ;;  %v160_v18 = vmul.f32 0.25603834, %v485_v15 }
  0x2e   :  { %v117_v34 = vadd.f32 %v113_v16, %v75_v27  ;;  %v69_v35 = vmul.f32 0.21061139, %v65_v28  ;;  %v107_v36 = vadd.f32 %v103_v31, %v81_v22  ;;  %v145_v37 = vsel %vm143_vm11, %v140_v33, 0.0 }
  0x2f   :  { %v149_v38 = vadd.f32 %v145_v37, %v123_v32  ;;  %v162_v28 = vmul.f32 0.25603834, %v442_v55 }
  0x30   :  { %v159_v39 = vadd.f32 %v155_v30, %v117_v34  ;;  %v73_v40 = vadd.f32 %v69_v35, %v31_v14  ;;  %v111_v41 = vmul.f32 0.11722289, %v107_v36 }
  0x31   :  { %v153_v42 = vmul.f32 0.044146545, %v149_v38 }
  0x32   :  { %170 = vrot.lane.b32.xlu1 %v159_v39, %s330_s0  ;;  %v115_v43 = vadd.f32 %v111_v41, %v73_v40  ;;  %v163_v8 = vmul.f32 0.25603834, %v159_v39 }
  0x34   :  { %v157_v44 = vadd.f32 %v153_v42, %v115_v43 }
  0x36   :  { %166 = vrot.lane.b32.xlu0 %v157_v44, %s330_s0  ;;  %174 = vrot.lane.b32.xlu1 %v157_v44, %s331_s20  ;;  %v161_v17 = vmul.f32 0.25603834, %v157_v44 }
  0x3a   :  { %172 = vrot.lane.b32.xlu0 %v485_v15, %s331_s20  ;;  %178 = vrot.lane.b32.xlu1 %v159_v39, %s331_s20 }
  0x3e   :  { %176 = vrot.lane.b32.xlu0 %v442_v55, %s331_s20  ;;  %194 = vrot.lane.b32.xlu1 %v157_v44, %s332_s21 }
  0x42   :  { %192 = vrot.lane.b32.xlu0 %v485_v15, %s332_s21  ;;  %198 = vrot.lane.b32.xlu1 %v159_v39, %s332_s21 }
  0x46   :  { %196 = vrot.lane.b32.xlu0 %v442_v55, %s332_s21  ;;  %202 = vrot.lane.b32.xlu1 %v157_v44, %s333_s22 }
  0x4a   :  { %200 = vrot.lane.b32.xlu0 %v485_v15, %s333_s22  ;;  %206 = vrot.lane.b32.xlu1 %v159_v39, %s333_s22 }
  0x4e   :  { %204 = vrot.lane.b32.xlu0 %v442_v55, %s333_s22  ;;  %222 = vrot.lane.b32.xlu1 %v157_v44, %s334_s23 }
  0x52   :  { %220 = vrot.lane.b32.xlu0 %v485_v15, %s334_s23  ;;  %226 = vrot.lane.b32.xlu1 %v159_v39, %s334_s23 }
  0x56   :  { %224 = vrot.lane.b32.xlu0 %v442_v55, %s334_s23  ;;  %230 = vrot.lane.b32.xlu1 %v157_v44, %s335_s24 }
  0x5a   :  { %228 = vrot.lane.b32.xlu0 %v485_v15, %s335_s24  ;;  %234 = vrot.lane.b32.xlu1 %v159_v39, %s335_s24 }
  0x5e   :  { %232 = vrot.lane.b32.xlu0 %v442_v55, %s335_s24 }
  0x97   :  { %v169_v1 = vpop.permute.xlu1 %168 }
  0x9e   :  { %v165_v4 = vpop.permute.xlu0 %164 }
  0xa4   :  { %v171_v45 = vpop.permute.xlu1 %170 }
  0xa8   :  { %v167_v46 = vpop.permute.xlu0 %166  ;;  %v175_v47 = vpop.permute.xlu1 %174 }
  0xa9   :  { %v181_v61 = vadd.f32 %v175_v47, %v167_v46 }
  0xab   :  { %v185_v6 = vmul.f32 0.21061139, %v181_v61 }
  0xac   :  { %v173_v48 = vpop.permute.xlu0 %172  ;;  %v179_v49 = vpop.permute.xlu1 %178 }
  0xad   :  { %v180_v63 = vadd.f32 %v173_v48, %v165_v4  ;;  %v183_v0 = vadd.f32 %v179_v49, %v171_v45  ;;  %v189_v12 = vadd.f32 %v185_v6, %v161_v17 }
  0xaf   :  { %v184_v23 = vmul.f32 0.21061139, %v180_v63  ;;  %v187_v9 = vmul.f32 0.21061139, %v183_v0 }
  0xb0   :  { %v177_v50 = vpop.permute.xlu0 %176  ;;  %v195_v51 = vpop.permute.xlu1 %194 }
  0xb1   :  { %v182_v14 = vadd.f32 %v177_v50, %v169_v1  ;;  %v188_v26 = vadd.f32 %v184_v23, %v160_v18  ;;  %v191_v27 = vadd.f32 %v187_v9, %v163_v8 }
  0xb3   :  { %v186_v29 = vmul.f32 0.21061139, %v182_v14 }
  0xb4   :  { %v193_v52 = vpop.permute.xlu0 %192  ;;  %v199_v53 = vpop.permute.xlu1 %198 }
  0xb5   :  { %v190_v39 = vadd.f32 %v186_v29, %v162_v28 }
  0xb8   :  { %v197_v54 = vpop.permute.xlu0 %196  ;;  %v203_v56 = vpop.permute.xlu1 %202 }
  0xb9   :  { %v209_v62 = vadd.f32 %v203_v56, %v195_v51 }
  0xbb   :  { %v213_v19 = vmul.f32 0.11722289, %v209_v62 }
  0xbc   :  { %v201_v57 = vpop.permute.xlu0 %200  ;;  %v207_v58 = vpop.permute.xlu1 %206 }
  0xbd   :  { %v208_v7 = vadd.f32 %v201_v57, %v193_v52  ;;  %v211_v21 = vadd.f32 %v207_v58, %v199_v53  ;;  %v217_v3 = vadd.f32 %v213_v19, %v189_v12 }
  0xbf   :  { %v212_v25 = vmul.f32 0.11722289, %v208_v7  ;;  %v215_v2 = vmul.f32 0.11722289, %v211_v21 }
  0xc0   :  { %v205_v59 = vpop.permute.xlu0 %204  ;;  %v223_v60 = vpop.permute.xlu1 %222 }
  0xc1   :  { %v210_v16 = vadd.f32 %v205_v59, %v197_v54  ;;  %v216_v33 = vadd.f32 %v212_v25, %v188_v26  ;;  %v219_v34 = vadd.f32 %v215_v2, %v191_v27 }
  0xc3   :  { %v214_v35 = vmul.f32 0.11722289, %v210_v16 }
  0xc4   :  { %v221_v5 = vpop.permute.xlu0 %220  ;;  %v227_v13 = vpop.permute.xlu1 %226 }
  0xc5   :  { %v218_v55 = vadd.f32 %v214_v35, %v190_v39 }
  0xc8   :  { %v225_v10 = vpop.permute.xlu0 %224  ;;  %v231_v11 = vpop.permute.xlu1 %230 }
  0xc9   :  { %v237_v24 = vadd.f32 %v231_v11, %v223_v60 }
  0xcb   :  { %v241_v20 = vmul.f32 0.044146545, %v237_v24 }
  0xcc   :  { %v229_v15 = vpop.permute.xlu0 %228  ;;  %v235_v22 = vpop.permute.xlu1 %234 }
  0xcd   :  { %v245_v30 = vadd.f32 %v241_v20, %v217_v3  ;;  %v236_v31 = vadd.f32 %v229_v15, %v221_v5  ;;  %v239_v32 = vadd.f32 %v235_v22, %v227_v13 }
  0xcf   :  { %249 = vst [vmem:[#allocation5 + $0x8] sm:$0xff] %v245_v30  ;;  %v240_v36 = vmul.f32 0.044146545, %v236_v31  ;;  %v243_v37 = vmul.f32 0.044146545, %v239_v32 }
  0xd0   :  { %v233_v38 = vpop.permute.xlu0 %232 }
  0xd1   :  { %v244_v40 = vadd.f32 %v240_v36, %v216_v33  ;;  %v247_v41 = vadd.f32 %v243_v37, %v219_v34  ;;  %v238_v42 = vadd.f32 %v233_v38, %v225_v10 }
  0xd3   :  { %248 = vst [vmem:[#allocation5] sm:$0xff] %v244_v40  ;;  %251 = vst [vmem:[#allocation5 + $0x18] sm:$0xff] %v247_v41  ;;  %v242_v43 = vmul.f32 0.044146545, %v238_v42 }
  0xd5   :  { %v246_v44 = vadd.f32 %v242_v43, %v218_v55 }
  0xd7   :  { %250 = vst [vmem:[#allocation5 + $0x10] sm:$0xff] %v246_v44 }
  0xd8   :  { %312 = shalt.err (!%p309_p12)
}
  0xd9   :  { %s313_s30 = scalar_lea.hbm %s533_s1, 512 }
  0xda   :  { %p314_p13 = scmp.ne.s32.totalorder %s533_s1, %s313_s30  ;;  %p317_p0 = scmp.lt.u32.totalorder %s313_s30, %s533_s1 }
  0xdc   :  { %p319_p1 = pnand %p317_p0, %p314_p13 }
  0xde   :  { %322 = shalt.err (!%p319_p1)
}
  0xdf   :  { %263 = dma.vmem_to_hbm [thread:$0]  %s258_s26, 512, %s533_s1, [#allocation4], %s328_s16, %s328_s16, %s329_s17  }
  0xe0   :  { %325 = dma.done.wait [#allocation4], 512  }
  0xe1   :  { %326 = vsyncadd [#allocation4], 4294966784 }
  0xe2   :  { %267 = vsyncpa [#allocation3], 1 }
  0xe3   :  { %268 = vsyncpa [#allocation4], 1 }

</bundles_post_ra>
